<compile_context>
chip_gen: v7x
topology: tpu7x:2x2x1
jax: 0.10.0
libtpu: 0.0.40
codegen_flags: <defaults>
</compile_context>

<pallas_src>
import jax
import jax.numpy as jnp
from jax.experimental import pallas as pl
from jax.experimental.pallas import tpu as pltpu

BINS = 256
HMIN = 0.0
HMAX = 1.0
SIGMA = 30.0 * 256
DELTA = (HMAX - HMIN) / float(BINS)

_PAD_SENTINEL = 1e30           # geometric mean stays finite; tanh saturates to +1 at every edge
_LANES = 128
_EDGE_ROWS = ((BINS + 1 + 7) // 8) * 8   # 257 edges needed, padded to a sublane multiple (264)


def _make_kernel(chunks, use_bf16_tanh):
    """Build the kernel for a tile of `chunks`*128 pixels."""

    def kernel(x_ref, out_ref):
        # x_ref  : (1, C, TN)              pixel tile (channels on sublanes, pixels on lanes)
        # out_ref: (1, 1, 264, 128)        lane-dense resident edge-sum accumulator for (b, outer)
        @pl.when(pl.program_id(2) == 0)
        def _():
            out_ref[...] = jnp.zeros_like(out_ref)

        x = x_ref[0]                                                    # (C, TN)
        # geometric mean over channels (small sublane reduce)
        g = jnp.exp(jnp.mean(jnp.log(jnp.maximum(x, 1e-6)),
                             axis=0, keepdims=True))                    # (1, TN)
        hg = (0.5 * SIGMA) * g                                          # (1, TN)

        # Per-edge half-arguments, generated in-kernel (hoisted once per grid step):
        #   arg(e, n) = 0.5*SIGMA*(g_n - HMIN - DELTA*e)
        rows = jax.lax.broadcasted_iota(jnp.int32, (_EDGE_ROWS, _LANES), 0)
        a = (-0.5 * SIGMA) * (HMIN + DELTA * rows.astype(jnp.float32))  # (264, 128)

        # Per-128-lane-chunk: one (264,128) tanh block accumulated straight into
        # the resident output block (no (BINS, TN) intermediate -> no spills).
        for c in range(chunks):
            arg = hg[:, c * _LANES:(c + 1) * _LANES] + a                # (264, 128)
            if use_bf16_tanh:
                t = jnp.tanh(arg.astype(jnp.bfloat16)).astype(jnp.float32)
            else:
                t = jnp.tanh(arg)                                       # EUP (binding slot)
            out_ref[...] += t[None, None]

    return kernel


def hist_entropy_loss(x, *, tile_n=1024, use_bf16_tanh=False):
    """x: NCHW float32 array. Returns scalar loss (float32)."""
    B, C, H, W = x.shape
    hw = H * W
    n_valid = B * hw

    x3 = x.reshape(B, C, hw)                            # free reshape, no transpose

    # Pixel tile: large (amortizes ~0.35us/step), multiple of 128, capped at hw.
    tn = max(_LANES, min((tile_n // _LANES) * _LANES, pl.cdiv(hw, _LANES) * _LANES))
    if hw > tn:
        # More than one tile: make the tile count even so the pixel axis splits
        # 2-way ("parallel") and both v7x TensorCores get work even for small B.
        n_outer = 2
        hw_pad = pl.cdiv(hw, n_outer * tn) * (n_outer * tn)
    else:
        n_outer = 1
        hw_pad = tn
    n_tiles = hw_pad // tn
    n_inner = n_tiles // n_outer

    if hw_pad != hw:
        # Sentinel pixels saturate every edge tanh to exactly +1, which cancels in
        # the adjacent-edge difference -> contribute exactly 0 to every bin.
        x3 = jnp.pad(x3, ((0, 0), (0, 0), (0, hw_pad - hw)),
                     constant_values=_PAD_SENTINEL)

    chunks = tn // _LANES
    kernel = _make_kernel(chunks, use_bf16_tanh)

    partial = pl.pallas_call(
        kernel,
        out_shape=jax.ShapeDtypeStruct((B, n_outer, _EDGE_ROWS, _LANES), jnp.float32),
        grid_spec=pltpu.PrefetchScalarGridSpec(
            num_scalar_prefetch=0,
            grid=(B, n_outer, n_inner),
            in_specs=[
                pl.BlockSpec((1, C, tn), lambda b, o, j: (b, 0, o * n_inner + j)),
            ],
            out_specs=pl.BlockSpec((1, 1, _EDGE_ROWS, _LANES),
                                   lambda b, o, j: (b, o, 0, 0)),
        ),
        compiler_params=pltpu.CompilerParams(
            dimension_semantics=("parallel", "parallel", "arbitrary")),
    )(x3)

    # Tiny finalization in plain JAX.
    #   sigmoid(u) = 0.5*(1 + tanh(u/2))  =>  hist[b] = 0.5*(T(edge_b) - T(edge_{b+1}))
    # Difference adjacent edges per lane first (small magnitudes), then reduce.
    hist = 0.5 * jnp.sum(partial[:, :, :BINS, :] - partial[:, :, 1:BINS + 1, :],
                         axis=(0, 1, 3))                                # (BINS,)
    p = hist / n_valid
    return 8.0 + jnp.sum(p * jnp.log2(jnp.maximum(p, 1e-6)))


def _reference(x):
    """Plain-JAX reference mirroring the PyTorch module (sigmoid form)."""
    g = jnp.exp(jnp.mean(jnp.log(jnp.maximum(x, 1e-6)), axis=1)).reshape(-1)      # [N]
    centers = HMIN + DELTA * (jnp.arange(BINS, dtype=jnp.float32) + 0.5)
    d = g[None, :] - centers[:, None]                                             # [BINS, N]
    k = (jax.nn.sigmoid(SIGMA * (d + DELTA / 2.0))
         - jax.nn.sigmoid(SIGMA * (d - DELTA / 2.0)))
    p = jnp.sum(k, axis=1) / g.shape[0]
    return 8.0 + jnp.sum(p * jnp.log2(jnp.maximum(p, 1e-6)))


if __name__ == "__main__":
    key = jax.random.PRNGKey(0)
    B, C, H, W = 2, 4, 16, 16
    x = jax.random.uniform(key, (B, C, H, W), dtype=jnp.float32, minval=0.0, maxval=1.0)

    loss = jax.block_until_ready(jax.jit(hist_entropy_loss)(x))
    ref = jax.block_until_ready(_reference(x))

    assert jnp.isfinite(loss), "non-finite loss"
    assert abs(float(loss) - float(ref)) < 1e-3, (float(loss), float(ref))
    print("KERNEL_OK")
</pallas_src>

<mosaic_0001>
module attributes {stable_mosaic.version = 11 : i64} {
  func.func @kernel(%arg0: i32, %arg1: i32, %arg2: i32, %arg3: memref<1x4x256xf32, #tpu.memory_space<vmem>>, %arg4: memref<1x1x264x128xf32, #tpu.memory_space<vmem>>) attributes {dimension_semantics = [#tpu.dimension_semantics<parallel>, #tpu.dimension_semantics<parallel>, #tpu.dimension_semantics<arbitrary>], iteration_bounds = array<i64: 2, 1, 1>, scalar_prefetch = 0 : i64, scratch_operands = 0 : i64, tpu.core_type = #tpu.core_type<tc>, window_params = [{transform_indices = @transform_0, window_bounds = array<i64: 1, 4, 256>}, {transform_indices = @transform_1, window_bounds = array<i64: 1, 1, 264, 128>}]} {
    %c0_i32 = arith.constant 0 : i32
    %0 = arith.cmpi eq, %arg2, %c0_i32 : i32
    %1 = arith.extui %0 : i1 to i32
    %c0_i32_0 = arith.constant 0 : i32
    %2 = arith.cmpi ne, %1, %c0_i32_0 : i32
    scf.if %2 {
      %cst_25 = arith.constant 0.000000e+00 : f32
      %39 = vector.broadcast %cst_25 : f32 to vector<1x1x264x128xf32>
      %c0_26 = arith.constant 0 : index
      %c0_27 = arith.constant 0 : index
      %c0_28 = arith.constant 0 : index
      %c0_29 = arith.constant 0 : index
      %40 = vector.load %arg4[%c0_26, %c0_27, %c0_28, %c0_29] : memref<1x1x264x128xf32, #tpu.memory_space<vmem>>, vector<1x1x264x128xf32>
      tpu.vector_store %arg4[%c0_26, %c0_27, %c0_28, %c0_29], %39 {strides = array<i32>} : memref<1x1x264x128xf32, #tpu.memory_space<vmem>>, vector<1x1x264x128xf32>,
    } else {
    }
    %c0 = arith.constant 0 : index
    %c0_1 = arith.constant 0 : index
    %c0_2 = arith.constant 0 : index
    %3 = vector.load %arg3[%c0, %c0_1, %c0_2] : memref<1x4x256xf32, #tpu.memory_space<vmem>>, vector<1x4x256xf32>
    %4 = vector.shape_cast %3 : vector<1x4x256xf32> to vector<4x256xf32>
    %cst = arith.constant 9.99999997E-7 : f32
    %5 = vector.broadcast %cst : f32 to vector<4x256xf32>
    %6 = arith.maximumf %4, %5 : vector<4x256xf32>
    %7 = math.log %6 : vector<4x256xf32>
    %cst_3 = arith.constant dense<0.000000e+00> : vector<256xf32>
    %8 = vector.multi_reduction <add>, %7, %cst_3 [0] : vector<4x256xf32> to vector<256xf32>
    %9 = vector.shape_cast %8 : vector<256xf32> to vector<1x256xf32>
    %cst_4 = arith.constant 4.000000e+00 : f32
    %10 = vector.broadcast %cst_4 : f32 to vector<1x256xf32>
    %11 = arith.divf %9, %10 : vector<1x256xf32>
    %12 = math.exp %11 : vector<1x256xf32>
    %cst_5 = arith.constant 3.840000e+03 : f32
    %13 = vector.broadcast %cst_5 : f32 to vector<1x256xf32>
    %14 = arith.mulf %13, %12 : vector<1x256xf32>
    %15 = tpu.iota {dimensions = array<i32: 0>} : vector<264x128xi32>
    %16 = arith.sitofp %15 : vector<264x128xi32> to vector<264x128xf32>
    %cst_6 = arith.constant 3.906250e-03 : f32
    %17 = vector.broadcast %cst_6 : f32 to vector<264x128xf32>
    %18 = arith.mulf %17, %16 : vector<264x128xf32>
    %cst_7 = arith.constant 0.000000e+00 : f32
    %19 = vector.broadcast %cst_7 : f32 to vector<264x128xf32>
    %20 = arith.addf %19, %18 : vector<264x128xf32>
    %cst_8 = arith.constant -3.840000e+03 : f32
    %21 = vector.broadcast %cst_8 : f32 to vector<264x128xf32>
    %22 = arith.mulf %21, %20 : vector<264x128xf32>
    %23 = vector.extract_strided_slice %14 {offsets = [0, 0], sizes = [1, 128], strides = [1, 1]} : vector<1x256xf32> to vector<1x128xf32>
    %24 = vector.broadcast %23 : vector<1x128xf32> to vector<264x128xf32>
    %25 = arith.addf %24, %22 : vector<264x128xf32>
    %26 = math.tanh %25 : vector<264x128xf32>
    %c0_9 = arith.constant 0 : index
    %c0_10 = arith.constant 0 : index
    %c0_11 = arith.constant 0 : index
    %c0_12 = arith.constant 0 : index
    %27 = vector.load %arg4[%c0_9, %c0_10, %c0_11, %c0_12] : memref<1x1x264x128xf32, #tpu.memory_space<vmem>>, vector<1x1x264x128xf32>
    %28 = vector.shape_cast %26 : vector<264x128xf32> to vector<1x1x264x128xf32>
    %29 = arith.addf %27, %28 : vector<1x1x264x128xf32>
    %c0_13 = arith.constant 0 : index
    %c0_14 = arith.constant 0 : index
    %c0_15 = arith.constant 0 : index
    %c0_16 = arith.constant 0 : index
    %30 = vector.load %arg4[%c0_13, %c0_14, %c0_15, %c0_16] : memref<1x1x264x128xf32, #tpu.memory_space<vmem>>, vector<1x1x264x128xf32>
    tpu.vector_store %arg4[%c0_13, %c0_14, %c0_15, %c0_16], %29 {strides = array<i32>} : memref<1x1x264x128xf32, #tpu.memory_space<vmem>>, vector<1x1x264x128xf32>,
    %31 = vector.extract_strided_slice %14 {offsets = [0, 128], sizes = [1, 128], strides = [1, 1]} : vector<1x256xf32> to vector<1x128xf32>
    %32 = vector.broadcast %31 : vector<1x128xf32> to vector<264x128xf32>
    %33 = arith.addf %32, %22 : vector<264x128xf32>
    %34 = math.tanh %33 : vector<264x128xf32>
    %c0_17 = arith.constant 0 : index
    %c0_18 = arith.constant 0 : index
    %c0_19 = arith.constant 0 : index
    %c0_20 = arith.constant 0 : index
    %35 = vector.load %arg4[%c0_17, %c0_18, %c0_19, %c0_20] : memref<1x1x264x128xf32, #tpu.memory_space<vmem>>, vector<1x1x264x128xf32>
    %36 = vector.shape_cast %34 : vector<264x128xf32> to vector<1x1x264x128xf32>
    %37 = arith.addf %35, %36 : vector<1x1x264x128xf32>
    %c0_21 = arith.constant 0 : index
    %c0_22 = arith.constant 0 : index
    %c0_23 = arith.constant 0 : index
    %c0_24 = arith.constant 0 : index
    %38 = vector.load %arg4[%c0_21, %c0_22, %c0_23, %c0_24] : memref<1x1x264x128xf32, #tpu.memory_space<vmem>>, vector<1x1x264x128xf32>
    tpu.vector_store %arg4[%c0_21, %c0_22, %c0_23, %c0_24], %37 {strides = array<i32>} : memref<1x1x264x128xf32, #tpu.memory_space<vmem>>, vector<1x1x264x128xf32>,
    return
  }
  func.func @transform_0(%arg0: i32, %arg1: i32, %arg2: i32) -> (i32, i32, i32) {
    %c1_i32 = arith.constant 1 : i32
    %0 = arith.muli %arg1, %c1_i32 : i32
    %1 = arith.addi %0, %arg2 : i32
    %c0_i32 = arith.constant 0 : i32
    %c0_i32_0 = arith.constant 0 : i32
    return %arg0, %c0_i32, %1 : i32, i32, i32
  }
  func.func @transform_1(%arg0: i32, %arg1: i32, %arg2: i32) -> (i32, i32, i32, i32) {
    %c0_i32 = arith.constant 0 : i32
    %c0_i32_0 = arith.constant 0 : i32
    %c0_i32_1 = arith.constant 0 : i32
    return %arg0, %arg1, %c0_i32, %c0_i32_0 : i32, i32, i32, i32
  }
}

</mosaic_0001>

<bundles_post_ra>
// kernel: hist_entropy_loss.1
= control target key start
LH: loop header
LB: loop body
LE: loop exit
PB: predicated region body
PF: predicated region fallthrough
CT: control target
= control target key end

     0   :  { %s1034_s6 = smov 0   ;;  %s1036_s7 = smov 0   ;;  %s1444_s0 = inlined_call_operand.vmem [shape: f32[2,4,256], index: 0, kind: input, shape index: {}]   ;;  %s1445_s1 = inlined_call_operand.vmem [shape: f32[2,1,264,128], index: 1, kind: output, shape index: {}]  }
   0x1   :  { %s1038_s8 = smov 0  }
   0x2 LB: > { %s30_s9 = sadd.s32 1, %s1018_s7  ;;  %p829_p0 = scmp.ge.s32.totalorder %s1022_s8, 1  ;;  %s1022_s8 = sphi %s1038_s8, %s11_s8   ;;  %s1018_s7 = sphi %s1036_s7, %s1449_s7   ;;  %s1014_s6 = sphi %s1034_s6, %s1448_s6  }
   0x3   : > { %p32_p1 = scmp.ge.s32.totalorder %s30_s9, 2  ;;  %p119_p2 = scmp.lt.s32.totalorder %s1022_s8, 3 }
   0x5   : > { %s1451_s9 = smov (%p32_p1, %s30_s9), 0  ;;  %p120_p3 = pnand %p829_p0, %p119_p2 }
   0x7   : > { %123 = sbr.rel (%p120_p3) target bundleno = 147 (0x93), region = 24 }
   0xe   : > { %p150_p4 = scmp.lt.s32.totalorder %s1014_s6, 1  ;;  %vm213_vm0 = vcmask 1043456   ;;  %v237_v9 = vlaneseq }
  0x10   : > { %s1453_s6 = smov (!%p150_p4, %s1014_s6), 1  ;;  %v1059_v11 = vshrl.u32 %v237_v9, 7 }
  0x11   : > { %s835_s10 = sshll.u32 %s1453_s6, 3  ;;  %s836_s14 = smul.u32 264, %s1453_s6 }
  0x12   : > { %s157_s13 = scalar_lea.vmem %s1444_s0, %s835_s10  ;;  %v239_v13 = vadd.s32 8, %v1059_v11  ;;  %v240_v14 = vadd.s32 16, %v1059_v11  ;;  %v241_v16 = vadd.s32 24, %v1059_v11  ;;  %v242_v17 = vadd.s32 32, %v1059_v11 }
  0x13   : > { %v206_v0 = vld [vmem:[%s157_s13] sm:$0xff]  ;;  %v271_v18 = vcvt.s32.f32 %v1059_v11  ;;  %v243_v19 = vadd.s32 40, %v1059_v11  ;;  %v244_v22 = vadd.s32 48, %v1059_v11  ;;  %v245_v26 = vadd.s32 56, %v1059_v11  ;;  %s1329_s17 = scalar_lea.vmem %s1445_s1, %s836_s14 }
  0x14   : > { %v207_v1 = vmax.f32 %v206_v0, 1e-06  ;;  %v272_v20 = vcvt.s32.f32 %v239_v13  ;;  %v273_v21 = vcvt.s32.f32 %v240_v14  ;;  %v274_v24 = vcvt.s32.f32 %v241_v16 }
  0x15   : > { %v275_v25 = vcvt.s32.f32 %v242_v17  ;;  %v304_v27 = vmul.f32 0.00390625, %v271_v18  ;;  %v276_v28 = vcvt.s32.f32 %v243_v19  ;;  %v277_v31 = vcvt.s32.f32 %v244_v22 }
  0x16   : > { %862 = vlog2.f32 %v207_v1  ;;  %v305_v29 = vmul.f32 0.00390625, %v272_v20  ;;  %v306_v30 = vmul.f32 0.00390625, %v273_v21  ;;  %v307_v32 = vmul.f32 0.00390625, %v274_v24 }
  0x17   : > { %v308_v33 = vmul.f32 0.00390625, %v275_v25  ;;  %v246_v34 = vadd.s32 64, %v1059_v11  ;;  %v278_v35 = vcvt.s32.f32 %v245_v26  ;;  %v1070_v37 = vmul.f32 -3840.0, %v304_v27 }
  0x18   : > { %v309_v38 = vmul.f32 0.00390625, %v276_v28  ;;  %v247_v39 = vadd.s32 72, %v1059_v11  ;;  %v1073_v40 = vmul.f32 -3840.0, %v305_v29  ;;  %v310_v41 = vmul.f32 0.00390625, %v277_v31 }
  0x19   : > { %v248_v42 = vadd.s32 80, %v1059_v11  ;;  %v249_v43 = vadd.s32 88, %v1059_v11  ;;  %v1077_v44 = vmul.f32 -3840.0, %v306_v30  ;;  %v1079_v45 = vmul.f32 -3840.0, %v307_v32 }
  0x1a   : > { %v1081_v46 = vmul.f32 -3840.0, %v308_v33  ;;  %v279_v47 = vcvt.s32.f32 %v246_v34  ;;  %v311_v48 = vmul.f32 0.00390625, %v278_v35  ;;  %v250_v49 = vadd.s32 96, %v1059_v11 }
  0x1b   : > { %v251_v50 = vadd.s32 104, %v1059_v11  ;;  %v1086_v52 = vmul.f32 -3840.0, %v309_v38  ;;  %v280_v53 = vcvt.s32.f32 %v247_v39  ;;  %v252_v54 = vadd.s32 112, %v1059_v11 }
  0x1c   : > { %v253_v55 = vadd.s32 120, %v1059_v11  ;;  %v281_v56 = vcvt.s32.f32 %v248_v42  ;;  %v282_v57 = vcvt.s32.f32 %v249_v43  ;;  %v254_v58 = vadd.s32 128, %v1059_v11 }
  0x1d   : > { %v255_v59 = vadd.s32 136, %v1059_v11  ;;  %v1092_v60 = vmul.f32 -3840.0, %v310_v41  ;;  %v312_v61 = vmul.f32 0.00390625, %v279_v47  ;;  %v256_v62 = vadd.s32 144, %v1059_v11 }
  0x1e   : > { %v1095_v0 = vmul.f32 -3840.0, %v311_v48  ;;  %v283_v1 = vcvt.s32.f32 %v250_v49  ;;  %v314_v9 = vmul.f32 0.00390625, %v281_v56  ;;  %v259_v16 = vadd.s32 168, %v1059_v11 }
  0x1f   : > { %v288_v13 = vcvt.s32.f32 %v255_v59  ;;  %v1099_v14 = vmul.f32 -3840.0, %v312_v61  ;;  %v260_v29 = vadd.s32 176, %v1059_v11 }
  0x20   : > { %v863_v2 = vpop.eup %862  ;;  %v316_v19 = vmul.f32 0.00390625, %v283_v1  ;;  %v1106_v26 = vmul.f32 -3840.0, %v314_v9  ;;  %v292_v32 = vcvt.s32.f32 %v259_v16 }
  0x21   : > { %v209_v3 = vmul.f32 0.6931472, %v863_v2  ;;  %v284_v2 = vcvt.s32.f32 %v251_v50  ;;  %v321_v28 = vmul.f32 0.00390625, %v288_v13  ;;  %v293_v50 = vcvt.s32.f32 %v260_v29 }
  0x22   : > { %v1113_v35 = vmul.f32 -3840.0, %v316_v19  ;;  %v266_v19 = vadd.s32 224, %v1059_v11 }
  0x23   : > { %v214_v4 = vsel %vm213_vm0, %v209_v3, 0.0  ;;  %v211_v36 = vcombine.high %v209_v3, %v209_v3  ;;  %v257_v3 = vadd.s32 152, %v1059_v11  ;;  %v317_v20 = vmul.f32 0.00390625, %v284_v2 }
  0x24   : > { %v215_v5 = vrot.slane %v214_v4, 4  ;;  %v1127_v49 = vmul.f32 -3840.0, %v321_v28  ;;  %v326_v1 = vmul.f32 0.00390625, %v293_v50  ;;  %v263_v2 = vadd.s32 200, %v1059_v11 }
  0x25   : > { %v221_v51 = vsel %vm213_vm0, %v211_v36, 0.0  ;;  %v290_v21 = vcvt.s32.f32 %v257_v3  ;;  %v1115_v36 = vmul.f32 -3840.0, %v317_v20 }
  0x26   : > { %v216_v6 = vadd.f32 %v215_v5, %v214_v4  ;;  %v222_v63 = vrot.slane %v221_v51, 4  ;;  %v313_v5 = vmul.f32 0.00390625, %v280_v53  ;;  %v296_v16 = vcvt.s32.f32 %v263_v2 }
  0x27   : > { %v323_v38 = vmul.f32 0.00390625, %v290_v21 }
  0x28   : > { %v217_v7 = vrot.slane %v216_v6, 2  ;;  %v223_v17 = vadd.f32 %v222_v63, %v221_v51  ;;  %v1104_v22 = vmul.f32 -3840.0, %v313_v5 }
  0x2a   : > { %v218_v8 = vadd.f32 %v217_v7, %v216_v6  ;;  %v285_v6 = vcvt.s32.f32 %v252_v54  ;;  %v286_v7 = vcvt.s32.f32 %v253_v55  ;;  %v224_v33 = vrot.slane %v223_v17, 2 }
  0x2b   : > { %v325_v54 = vmul.f32 0.00390625, %v292_v32  ;;  %v329_v32 = vmul.f32 0.00390625, %v296_v16 }
  0x2c   : > { %v219_v10 = vrot.slane %v218_v8, 1  ;;  %v319_v24 = vmul.f32 0.00390625, %v286_v7  ;;  %v225_v55 = vadd.f32 %v224_v33, %v223_v17  ;;  %v267_v33 = vadd.s32 232, %v1059_v11 }
  0x2e   : > { %v220_v12 = vadd.f32 %v219_v10, %v218_v8  ;;  %v258_v8 = vadd.s32 160, %v1059_v11  ;;  %v315_v10 = vmul.f32 0.00390625, %v282_v57  ;;  %v1121_v42 = vmul.f32 -3840.0, %v319_v24 }
  0x2f   : > { %v1135_v57 = vmul.f32 -3840.0, %v323_v38  ;;  %v226_v5 = vrot.slane %v225_v55, 1  ;;  %v300_v2 = vcvt.s32.f32 %v267_v33 }
  0x30   : > { %v229_v15 = vmul.f32 0.25, %v220_v12  ;;  %v287_v12 = vcvt.s32.f32 %v254_v58  ;;  %v291_v25 = vcvt.s32.f32 %v258_v8  ;;  %v1109_v30 = vmul.f32 -3840.0, %v315_v10 }
  0x31   : > { %v261_v58 = vadd.s32 184, %v1059_v11  ;;  %v264_v8 = vadd.s32 208, %v1059_v11  ;;  %v227_v20 = vadd.f32 %v226_v5, %v225_v55 }
  0x32   : > { %v231_v23 = vmul.f32 1.442695, %v229_v15  ;;  %v289_v15 = vcvt.s32.f32 %v256_v62  ;;  %v320_v27 = vmul.f32 0.00390625, %v287_v12  ;;  %v324_v43 = vmul.f32 0.00390625, %v291_v25 }
  0x33   : > { %v262_v62 = vadd.s32 192, %v1059_v11  ;;  %v294_v7 = vcvt.s32.f32 %v261_v58  ;;  %v265_v12 = vadd.s32 216, %v1059_v11  ;;  %v297_v24 = vcvt.s32.f32 %v264_v8 }
  0x34   : > { %864 = vpow2.f32 %v231_v23  ;;  %v318_v23 = vmul.f32 0.00390625, %v285_v6  ;;  %v322_v31 = vmul.f32 0.00390625, %v289_v15  ;;  %v1125_v48 = vmul.f32 -3840.0, %v320_v27 }
  0x35   : > { %v1140_v61 = vmul.f32 -3840.0, %v324_v43  ;;  %v295_v10 = vcvt.s32.f32 %v262_v62  ;;  %v1158_v15 = vmul.f32 -3840.0, %v326_v1  ;;  %v298_v28 = vcvt.s32.f32 %v265_v12 }
  0x36   : > { %v1119_v41 = vmul.f32 -3840.0, %v318_v23  ;;  %v1131_v53 = vmul.f32 -3840.0, %v322_v31  ;;  %v327_v23 = vmul.f32 0.00390625, %v294_v7  ;;  %v230_v43 = vmul.f32 0.25, %v227_v20 }
  0x37   : > { %v328_v27 = vmul.f32 0.00390625, %v295_v10  ;;  %v330_v1 = vmul.f32 0.00390625, %v297_v24  ;;  %v331_v5 = vmul.f32 0.00390625, %v298_v28 }
  0x38   : > { %v1186_v58 = vmul.f32 -3840.0, %v327_v23  ;;  %v233_v7 = vmul.f32 1.442695, %v230_v43  ;;  %v333_v23 = vmul.f32 0.00390625, %v300_v2 }
  0x3e   : > { %v865_v4 = vpop.eup %864 }
  0x3f   : > { %v1102_v18 = vmul.f32 3840.0, %v865_v4  ;;  %v1148_v4 = vmul.f32 -3840.0, %v325_v54  ;;  %v269_v54 = vadd.s32 248, %v1059_v11 }
  0x41   : > { %v403_v34 = vadd.f32 %v1070_v37, %v1102_v18  ;;  %v404_v39 = vadd.f32 %v1073_v40, %v1102_v18  ;;  %v405_v47 = vadd.f32 %v1077_v44, %v1102_v18  ;;  %v406_v51 = vadd.f32 %v1079_v45, %v1102_v18 }
  0x42   : > { %v407_v56 = vadd.f32 %v1081_v46, %v1102_v18  ;;  %v408_v59 = vadd.f32 %v1086_v52, %v1102_v18  ;;  %v409_v63 = vadd.f32 %v1092_v60, %v1102_v18  ;;  %v410_v3 = vadd.f32 %v1095_v0, %v1102_v18 }
  0x43   : > { %866 = vtanh.f32 %v403_v34  ;;  %v411_v6 = vadd.f32 %v1099_v14, %v1102_v18  ;;  %v412_v9 = vadd.f32 %v1104_v22, %v1102_v18  ;;  %v413_v13 = vadd.f32 %v1106_v26, %v1102_v18 }
  0x44   : > { %868 = vtanh.f32 %v404_v39  ;;  %v414_v17 = vadd.f32 %v1109_v30, %v1102_v18  ;;  %v415_v21 = vadd.f32 %v1113_v35, %v1102_v18  ;;  %v416_v25 = vadd.f32 %v1115_v36, %v1102_v18 }
  0x45   : > { %870 = vtanh.f32 %v405_v47  ;;  %v417_v31 = vadd.f32 %v1119_v41, %v1102_v18  ;;  %v418_v38 = vadd.f32 %v1121_v42, %v1102_v18  ;;  %v268_v39 = vadd.s32 240, %v1059_v11 }
  0x46   : > { %872 = vtanh.f32 %v406_v51  ;;  %v419_v50 = vadd.f32 %v1125_v48, %v1102_v18  ;;  %v299_v51 = vcvt.s32.f32 %v266_v19  ;;  %v302_v10 = vcvt.s32.f32 %v269_v54 }
  0x47   : > { %874 = vtanh.f32 %v407_v56  ;;  %v420_v56 = vadd.f32 %v1127_v49, %v1102_v18  ;;  %v424_v20 = vadd.f32 %v1148_v4, %v1102_v18  ;;  %v426_v33 = vadd.f32 %v1186_v58, %v1102_v18 }
  0x48   : > { %876 = vtanh.f32 %v408_v59  ;;  %v270_v59 = vadd.s32 256, %v1059_v11  ;;  %v422_v11 = vadd.f32 %v1135_v57, %v1102_v18  ;;  %v332_v16 = vmul.f32 0.00390625, %v299_v51 }
  0x49   : > { %878 = vtanh.f32 %v409_v63  ;;  %v421_v63 = vadd.f32 %v1131_v53, %v1102_v18 }
  0x4a   : > { %880 = vtanh.f32 %v410_v3 }
  0x4b   : > { %882 = vtanh.f32 %v411_v6  ;;  %v301_v6 = vcvt.s32.f32 %v268_v39 }
  0x4c   : > { %884 = vtanh.f32 %v412_v9  ;;  %v1199_v9 = vmul.f32 -3840.0, %v328_v27  ;;  %v1215_v27 = vmul.f32 -3840.0, %v330_v1 }
  0x4d   : > { %v1167_v29 = vpop.eup %866  ;;  %886 = vtanh.f32 %v413_v13  ;;  %v423_v13 = vadd.f32 %v1140_v61, %v1102_v18  ;;  %v334_v28 = vmul.f32 0.00390625, %v301_v6 }
  0x4e   : > { %v1172_v34 = vpop.eup %868  ;;  %888 = vtanh.f32 %v414_v17  ;;  %v303_v17 = vcvt.s32.f32 %v270_v59  ;;  %v427_v43 = vadd.f32 %v1199_v9, %v1102_v18  ;;  %v1233_v59 = vmul.f32 -3840.0, %v333_v23 }
  0x4f   : > { %v1177_v47 = vpop.eup %870  ;;  %890 = vtanh.f32 %v415_v21  ;;  %v1209_v21 = vmul.f32 -3840.0, %v329_v32  ;;  %v335_v32 = vmul.f32 0.00390625, %v302_v10  ;;  %v429_v1 = vadd.f32 %v1215_v27, %v1102_v18 }
  0x50   : > { %v1182_v55 = vpop.eup %872  ;;  %892 = vtanh.f32 %v416_v25  ;;  %v425_v25 = vadd.f32 %v1158_v15, %v1102_v18  ;;  %v336_v51 = vmul.f32 0.00390625, %v303_v17  ;;  %v1239_v2 = vmul.f32 -3840.0, %v334_v28 }
  0x51   : > { %v1189_v62 = vpop.eup %874  ;;  %894 = vtanh.f32 %v417_v31  ;;  %v432_v17 = vadd.f32 %v1233_v59, %v1102_v18 }
  0x52   : > { %v1193_v3 = vpop.eup %876  ;;  %896 = vtanh.f32 %v418_v38  ;;  %v1221_v38 = vmul.f32 -3840.0, %v331_v5  ;;  %v433_v23 = vadd.f32 %v1239_v2, %v1102_v18 }
  0x53   : > { %v1195_v8 = vpop.eup %878  ;;  %898 = vtanh.f32 %v419_v50  ;;  %v1227_v50 = vmul.f32 -3840.0, %v332_v16 }
  0x54   : > { %v1201_v12 = vpop.eup %880  ;;  %900 = vtanh.f32 %v420_v56  ;;  %v428_v56 = vadd.f32 %v1209_v21, %v1102_v18  ;;  %v430_v6 = vadd.f32 %v1221_v38, %v1102_v18 }
  0x55   : > { %v1205_v19 = vpop.eup %882  ;;  %902 = vtanh.f32 %v421_v63  ;;  %v431_v10 = vadd.f32 %v1227_v50, %v1102_v18 }
  0x56   : > { %v1211_v24 = vpop.eup %884  ;;  %904 = vpow2.f32 %v233_v7  ;;  %v1245_v7 = vmul.f32 -3840.0, %v335_v32 }
  0x57   : > { %v1217_v31 = vpop.eup %886  ;;  %906 = vtanh.f32 %v422_v11 }
  0x58   : > { %v1223_v39 = vpop.eup %888  ;;  %908 = vtanh.f32 %v423_v13  ;;  %v1251_v13 = vmul.f32 -3840.0, %v336_v51  ;;  %v434_v28 = vadd.f32 %v1245_v7, %v1102_v18 }
  0x59   : > { %v1229_v54 = vpop.eup %890  ;;  %910 = vtanh.f32 %v424_v20 }
  0x5a   : > { %v1235_v63 = vpop.eup %892  ;;  %912 = vtanh.f32 %v425_v25  ;;  %v435_v32 = vadd.f32 %v1251_v13, %v1102_v18 }
  0x5b   : > { %v1241_v5 = vpop.eup %894  ;;  %914 = vtanh.f32 %v426_v33 }
  0x5c   : > { %v1247_v11 = vpop.eup %896  ;;  %916 = vtanh.f32 %v427_v43 }
  0x5d   : > { %v1253_v16 = vpop.eup %898  ;;  %918 = vtanh.f32 %v428_v56 }
  0x5e   : > { %v1257_v20 = vpop.eup %900  ;;  %920 = vtanh.f32 %v429_v1 }
  0x5f   : > { %v1261_v25 = vpop.eup %902  ;;  %922 = vtanh.f32 %v430_v6 }
  0x60   : > { %1446 = vst [vmem:[#allocation2_spill] sm:$0xff] %v1261_v25  ;;  %v905_v33 = vpop.eup %904  ;;  %924 = vtanh.f32 %v431_v10 }
  0x61   : > { %v1267_v43 = vpop.eup %906  ;;  %926 = vtanh.f32 %v432_v17  ;;  %v1269_v51 = vmul.f32 3840.0, %v905_v33 }
  0x62   : > { %v1271_v56 = vpop.eup %908  ;;  %928 = vtanh.f32 %v433_v23 }
  0x63   : > { %v1273_v1 = vpop.eup %910  ;;  %930 = vtanh.f32 %v434_v28  ;;  %v568_v6 = vadd.f32 %v1070_v37, %v1269_v51  ;;  %v569_v10 = vadd.f32 %v1073_v40, %v1269_v51  ;;  %v570_v18 = vadd.f32 %v1077_v44, %v1269_v51 }
  0x64   : > { %v1281_v25 = vpop.eup %912  ;;  %932 = vtanh.f32 %v435_v32  ;;  %v571_v17 = vadd.f32 %v1079_v45, %v1269_v51  ;;  %v572_v23 = vadd.f32 %v1081_v46, %v1269_v51  ;;  %v573_v37 = vadd.f32 %v1086_v52, %v1269_v51 }
  0x65   : > { %v1285_v33 = vpop.eup %914  ;;  %934 = vtanh.f32 %v568_v6  ;;  %v574_v44 = vadd.f32 %v1092_v60, %v1269_v51  ;;  %v575_v32 = vadd.f32 %v1095_v0, %v1269_v51  ;;  %v576_v6 = vadd.f32 %v1099_v14, %v1269_v51 }
  0x66   : > { %v1289_v28 = vpop.eup %916  ;;  %936 = vtanh.f32 %v569_v10  ;;  %v577_v52 = vadd.f32 %v1104_v22, %v1269_v51  ;;  %v578_v60 = vadd.f32 %v1106_v26, %v1269_v51  ;;  %v582_v26 = vadd.f32 %v1119_v41, %v1269_v51 }
  0x67   : > { %v1293_v40 = vpop.eup %918  ;;  %938 = vtanh.f32 %v570_v18 }
  0x68   : > { %v1297_v45 = vpop.eup %920  ;;  %940 = vtanh.f32 %v571_v17  ;;  %v579_v17 = vadd.f32 %v1109_v30, %v1269_v51 }
  0x69   : > { %v1301_v46 = vpop.eup %922  ;;  %942 = vtanh.f32 %v572_v23  ;;  %v580_v23 = vadd.f32 %v1113_v35, %v1269_v51 }
  0x6a   : > { %v1305_v10 = vpop.eup %924  ;;  %944 = vtanh.f32 %v573_v37  ;;  %v581_v37 = vadd.f32 %v1115_v36, %v1269_v51 }
  0x6b   : > { %v1309_v18 = vpop.eup %926  ;;  %946 = vtanh.f32 %v574_v44 }
  0x6c   : > { %v1314_v0 = vpop.eup %928  ;;  %948 = vtanh.f32 %v575_v32  ;;  %v583_v32 = vadd.f32 %v1121_v42, %v1269_v51 }
  0x6d   : > { %v1318_v14 = vpop.eup %930  ;;  %950 = vtanh.f32 %v576_v6 }
  0x6e   : > { %v1322_v22 = vpop.eup %932  ;;  %952 = vtanh.f32 %v577_v52  ;;  %v584_v52 = vadd.f32 %v1125_v48, %v1269_v51 }
  0x6f   : > { %v935_v44 = vpop.eup %934  ;;  %954 = vtanh.f32 %v578_v60 }
  0x70   : > { %v937_v30 = vpop.eup %936  ;;  %v667_v35 = vadd.f32 %v935_v44, %v1167_v29  ;;  %956 = vtanh.f32 %v579_v17  ;;  %v585_v29 = vadd.f32 %v1127_v49, %v1269_v51 }
  0x71   : > { %v939_v36 = vpop.eup %938  ;;  %v668_v6 = vadd.f32 %v937_v30, %v1172_v34  ;;  %958 = vtanh.f32 %v580_v23  ;;  %v586_v34 = vadd.f32 %v1131_v53, %v1269_v51 }
  0x72   : > { %v941_v60 = vpop.eup %940  ;;  %700 = vst [vmem:[%s1329_s17] sm:$0xff] %v667_v35  ;;  %v669_v41 = vadd.f32 %v939_v36, %v1177_v47  ;;  %960 = vtanh.f32 %v581_v37  ;;  %v587_v47 = vadd.f32 %v1135_v57, %v1269_v51 }
  0x73   : > { %v943_v17 = vpop.eup %942  ;;  %701 = vst [vmem:[%s1329_s17 + $0x8] sm:$0xff] %v668_v6  ;;  %v670_v42 = vadd.f32 %v941_v60, %v1182_v55  ;;  %962 = vtanh.f32 %v582_v26  ;;  %v588_v55 = vadd.f32 %v1140_v61, %v1269_v51 }
  0x74   : > { %v945_v23 = vpop.eup %944  ;;  %702 = vst [vmem:[%s1329_s17 + $0x10] sm:$0xff] %v669_v41  ;;  %v671_v48 = vadd.f32 %v943_v17, %v1189_v62  ;;  %964 = vtanh.f32 %v583_v32  ;;  %v589_v62 = vadd.f32 %v1148_v4, %v1269_v51 }
  0x75   : > { %v947_v37 = vpop.eup %946  ;;  %703 = vst [vmem:[%s1329_s17 + $0x18] sm:$0xff] %v670_v42  ;;  %v672_v49 = vadd.f32 %v945_v23, %v1193_v3  ;;  %966 = vtanh.f32 %v584_v52  ;;  %v590_v3 = vadd.f32 %v1158_v15, %v1269_v51  ;;  %v1447_v42 = vld [vmem:[#allocation2_spill] sm:$0xff] }
  0x76   : > { %v949_v44 = vpop.eup %948  ;;  %704 = vst [vmem:[%s1329_s17 + $0x20] sm:$0xff] %v671_v48  ;;  %v673_v53 = vadd.f32 %v947_v37, %v1195_v8  ;;  %968 = vtanh.f32 %v585_v29  ;;  %v591_v8 = vadd.f32 %v1186_v58, %v1269_v51 }
  0x77   : > { %v951_v26 = vpop.eup %950  ;;  %705 = vst [vmem:[%s1329_s17 + $0x28] sm:$0xff] %v672_v49  ;;  %v674_v57 = vadd.f32 %v949_v44, %v1201_v12  ;;  %970 = vtanh.f32 %v586_v34  ;;  %v592_v12 = vadd.f32 %v1199_v9, %v1269_v51 }
  0x78   : > { %v953_v30 = vpop.eup %952  ;;  %706 = vst [vmem:[%s1329_s17 + $0x30] sm:$0xff] %v673_v53  ;;  %v675_v61 = vadd.f32 %v951_v26, %v1205_v19  ;;  %972 = vtanh.f32 %v587_v47  ;;  %v593_v19 = vadd.f32 %v1209_v21, %v1269_v51 }
  0x79   : > { %v955_v35 = vpop.eup %954  ;;  %707 = vst [vmem:[%s1329_s17 + $0x38] sm:$0xff] %v674_v57  ;;  %v676_v4 = vadd.f32 %v953_v30, %v1211_v24  ;;  %974 = vtanh.f32 %v588_v55  ;;  %v594_v24 = vadd.f32 %v1215_v27, %v1269_v51 }
  0x7a   : > { %v957_v32 = vpop.eup %956  ;;  %708 = vst [vmem:[%s1329_s17 + $0x40] sm:$0xff] %v675_v61  ;;  %v677_v15 = vadd.f32 %v955_v35, %v1217_v31  ;;  %976 = vtanh.f32 %v589_v62  ;;  %v595_v31 = vadd.f32 %v1221_v38, %v1269_v51 }
  0x7b   : > { %v959_v36 = vpop.eup %958  ;;  %709 = vst [vmem:[%s1329_s17 + $0x48] sm:$0xff] %v676_v4  ;;  %v678_v58 = vadd.f32 %v957_v32, %v1223_v39  ;;  %978 = vtanh.f32 %v590_v3  ;;  %v596_v39 = vadd.f32 %v1227_v50, %v1269_v51 }
  0x7c   : > { %v961_v6 = vpop.eup %960  ;;  %710 = vst [vmem:[%s1329_s17 + $0x50] sm:$0xff] %v677_v15  ;;  %v679_v9 = vadd.f32 %v959_v36, %v1229_v54  ;;  %980 = vtanh.f32 %v591_v8  ;;  %v597_v54 = vadd.f32 %v1233_v59, %v1269_v51 }
  0x7d   : > { %v963_v52 = vpop.eup %962  ;;  %711 = vst [vmem:[%s1329_s17 + $0x58] sm:$0xff] %v678_v58  ;;  %v680_v21 = vadd.f32 %v961_v6, %v1235_v63  ;;  %982 = vtanh.f32 %v592_v12  ;;  %v598_v63 = vadd.f32 %v1239_v2, %v1269_v51 }
  0x7e   : > { %v965_v60 = vpop.eup %964  ;;  %712 = vst [vmem:[%s1329_s17 + $0x60] sm:$0xff] %v679_v9  ;;  %v681_v27 = vadd.f32 %v963_v52, %v1241_v5  ;;  %984 = vtanh.f32 %v593_v19  ;;  %v599_v5 = vadd.f32 %v1245_v7, %v1269_v51 }
  0x7f   : > { %v967_v41 = vpop.eup %966  ;;  %713 = vst [vmem:[%s1329_s17 + $0x68] sm:$0xff] %v680_v21  ;;  %v682_v38 = vadd.f32 %v965_v60, %v1247_v11  ;;  %986 = vtanh.f32 %v594_v24  ;;  %v600_v11 = vadd.f32 %v1251_v13, %v1269_v51 }
  0x80   : > { %v969_v50 = vpop.eup %968  ;;  %714 = vst [vmem:[%s1329_s17 + $0x70] sm:$0xff] %v681_v27  ;;  %v683_v29 = vadd.f32 %v967_v41, %v1253_v16  ;;  %988 = vtanh.f32 %v595_v31 }
  0x81   : > { %v971_v59 = vpop.eup %970  ;;  %715 = vst [vmem:[%s1329_s17 + $0x78] sm:$0xff] %v682_v38  ;;  %v684_v17 = vadd.f32 %v969_v50, %v1257_v20  ;;  %990 = vtanh.f32 %v596_v39 }
  0x82   : > { %v973_v2 = vpop.eup %972  ;;  %716 = vst [vmem:[%s1329_s17 + $0x80] sm:$0xff] %v683_v29  ;;  %v685_v34 = vadd.f32 %v971_v59, %v1447_v42  ;;  %992 = vtanh.f32 %v597_v54 }
  0x83   : > { %v975_v16 = vpop.eup %974  ;;  %717 = vst [vmem:[%s1329_s17 + $0x88] sm:$0xff] %v684_v17  ;;  %v686_v7 = vadd.f32 %v973_v2, %v1267_v43  ;;  %994 = vtanh.f32 %v598_v63 }
  0x84   : > { %v977_v23 = vpop.eup %976  ;;  %718 = vst [vmem:[%s1329_s17 + $0x90] sm:$0xff] %v685_v34  ;;  %v687_v20 = vadd.f32 %v975_v16, %v1271_v56  ;;  %996 = vtanh.f32 %v599_v5 }
  0x85   : > { %v979_v13 = vpop.eup %978  ;;  %719 = vst [vmem:[%s1329_s17 + $0x98] sm:$0xff] %v686_v7  ;;  %v688_v51 = vadd.f32 %v977_v23, %v1273_v1  ;;  %998 = vtanh.f32 %v600_v11 }
  0x86   : > { %v981_v48 = vpop.eup %980  ;;  %720 = vst [vmem:[%s1329_s17 + $0xa0] sm:$0xff] %v687_v20  ;;  %v689_v47 = vadd.f32 %v979_v13, %v1281_v25 }
  0x87   : > { %v983_v43 = vpop.eup %982  ;;  %721 = vst [vmem:[%s1329_s17 + $0xa8] sm:$0xff] %v688_v51  ;;  %v690_v37 = vadd.f32 %v981_v48, %v1285_v33 }
  0x88   : > { %v985_v49 = vpop.eup %984  ;;  %722 = vst [vmem:[%s1329_s17 + $0xb0] sm:$0xff] %v689_v47  ;;  %v691_v56 = vadd.f32 %v983_v43, %v1289_v28 }
  0x89   : > { %v987_v55 = vpop.eup %986  ;;  %723 = vst [vmem:[%s1329_s17 + $0xb8] sm:$0xff] %v690_v37  ;;  %v692_v1 = vadd.f32 %v985_v49, %v1293_v40 }
  0x8a   : > { %v989_v44 = vpop.eup %988  ;;  %724 = vst [vmem:[%s1329_s17 + $0xc0] sm:$0xff] %v691_v56  ;;  %v693_v25 = vadd.f32 %v987_v55, %v1297_v45 }
  0x8b   : > { %v991_v53 = vpop.eup %990  ;;  %725 = vst [vmem:[%s1329_s17 + $0xc8] sm:$0xff] %v692_v1  ;;  %v694_v33 = vadd.f32 %v989_v44, %v1301_v46 }
  0x8c   : > { %v993_v62 = vpop.eup %992  ;;  %726 = vst [vmem:[%s1329_s17 + $0xd0] sm:$0xff] %v693_v25  ;;  %v695_v28 = vadd.f32 %v991_v53, %v1305_v10 }
  0x8d   : > { %v995_v26 = vpop.eup %994  ;;  %727 = vst [vmem:[%s1329_s17 + $0xd8] sm:$0xff] %v694_v33  ;;  %v696_v40 = vadd.f32 %v993_v62, %v1309_v18 }
  0x8e   : > { %v997_v57 = vpop.eup %996  ;;  %728 = vst [vmem:[%s1329_s17 + $0xe0] sm:$0xff] %v695_v28  ;;  %v697_v3 = vadd.f32 %v995_v26, %v1314_v0 }
  0x8f   : > { %v999_v45 = vpop.eup %998  ;;  %729 = vst [vmem:[%s1329_s17 + $0xe8] sm:$0xff] %v696_v40  ;;  %v698_v30 = vadd.f32 %v997_v57, %v1318_v14 }
  0x90   : > { %730 = vst [vmem:[%s1329_s17 + $0xf0] sm:$0xff] %v697_v3  ;;  %v699_v46 = vadd.f32 %v999_v45, %v1322_v22 }
  0x91   : > { %731 = vst [vmem:[%s1329_s17 + $0xf8] sm:$0xff] %v698_v30 }
  0x92   : > { %732 = vst [vmem:[%s1329_s17 + $0x100] sm:$0xff] %v699_v46 }
  0x93 PF: > { %s11_s8 = sadd.s32 1, %s1022_s8   ;;  %s1448_s6 = smov %s1018_s7 }
  0x94   : > { %p8_p5 = scmp.ge.s32.totalorder %s11_s8, 4   ;;  %s1449_s7 = smov %s1451_s9 }
  0x96   :  { %10 = sbr.rel (!%p8_p5) target bundleno = 2 (0x2), region = 58 }

</bundles_post_ra>
